<compile_context>
chip_gen: v7x
topology: tpu7x:2x2x1
jax: 0.10.0
libtpu: 0.0.40
codegen_flags: <defaults>
</compile_context>

<pallas_src>
import functools
import math

import jax
import jax.numpy as jnp
from jax import lax
from jax.experimental import pallas as pl
from jax.experimental.pallas import tpu as pltpu

SMOOTH = 1e-05
_LANE = 128


def _round_up(x, m):
    return (x + m - 1) // m * m


def _cdiv(a, b):
    return (a + b - 1) // b


def _device_kind():
    try:
        dev = jax.devices()[0]
        if dev.platform != "tpu":
            return ""
        return dev.device_kind.lower()
    except Exception:
        return ""


def _dice_partial_kernel(pred_ref, lbl_ref, out_ref, *, B, C, nchunks,
                         last_chunks, last_lanes, split_last, step_last):
    """Accumulate lane-dense partial sums for one spatial tile.

    pred_ref: (B*C, tile) or (B, C, tile) float block (bf16/f32), upcast in-kernel.
    lbl_ref : (B, tile) integer label block.
    out_ref : (2, B, C, 128) float32 block resident across the reduction grid axis;
              row 0 = intersection partials, row 1 = pred-sum partials.
    """
    s = pl.program_id(1)

    @pl.when(s == 0)
    def _init():
        out_ref[...] = jnp.zeros_like(out_ref)

    # Class-index iota, hoisted out of the chunk loop (JAX does not CSE broadcasts).
    cls = lax.broadcasted_iota(jnp.int32, (B, C, _LANE), 1)
    flat_rows = len(pred_ref.shape) == 2

    def _chunk(j, carry, lane_limit=0):
        i_p, p_p = carry
        off = j * _LANE
        if not isinstance(j, int):
            off = pl.multiple_of(off, _LANE)
        if flat_rows:
            pred = pred_ref[:, pl.ds(off, _LANE)]                 # (B*C, 128)
            pred = pred.astype(jnp.float32).reshape(B, C, _LANE)  # free relayout
        else:
            pred = pred_ref[:, :, pl.ds(off, _LANE)].astype(jnp.float32)
        if lane_limit:  # static tail mask; only emitted for the ragged chunk
            lane = lax.broadcasted_iota(jnp.int32, (B, C, _LANE), 2)
            pred = jnp.where(lane < lane_limit, pred, 0.0)
        lbl = lbl_ref[:, pl.ds(off, _LANE)].astype(jnp.int32)[:, None, :]
        # TODO(synk): compare in native int8 (C <= 127) once verified on v7x bundles.
        onehot = lbl == cls                                       # (B, C, 128)
        return i_p + jnp.where(onehot, pred, 0.0), p_p + pred

    def _accumulate(n_full, tail_lanes):
        zeros = jnp.zeros((B, C, _LANE), jnp.float32)
        carry = (zeros, zeros)
        if n_full > 0:
            carry = lax.fori_loop(0, n_full, _chunk, carry, unroll=min(8, n_full))
        if tail_lanes:
            carry = _chunk(n_full, carry, lane_limit=tail_lanes)
        i_p, p_p = carry
        # Lane-dense accumulation into the resident output block (no cross-lane reduce).
        out_ref[0, :, :, :] += i_p
        out_ref[1, :, :, :] += p_p

    if last_chunks == nchunks and last_lanes == 0:
        # Spatial size divides the tile: single unmasked path, zero tail overhead.
        _accumulate(nchunks, 0)
    else:
        is_last = jnp.logical_and(pl.program_id(0) == split_last, s == step_last)

        @pl.when(jnp.logical_not(is_last))
        def _full_tile():
            _accumulate(nchunks, 0)

        @pl.when(is_last)
        def _ragged_tile():
            _accumulate(last_chunks, last_lanes)


def _partial_sums(pred, labels, *, B, C, S, tile, steps, num_splits,
                  dim_semantics, pred_buffers, flat_rows):
    """Run the Pallas reduction; returns float32 (2, B, C) = [intersection, pred_sum]."""
    steps_per_split = steps // num_splits
    nchunks = tile // _LANE
    rem = S - (steps - 1) * tile          # valid lanes in the globally last tile
    last_chunks, last_lanes = rem // _LANE, rem % _LANE

    kernel = functools.partial(
        _dice_partial_kernel, B=B, C=C, nchunks=nchunks,
        last_chunks=last_chunks, last_lanes=last_lanes,
        split_last=num_splits - 1, step_last=steps_per_split - 1)

    if flat_rows:
        pred_flat = pred.reshape(B * C, S)
        pred_block = (B * C, tile)
        pred_index = lambda p, s: (0, p * steps_per_split + s)
    else:
        pred_flat = pred.reshape(B, C, S)
        pred_block = (B, C, tile)
        pred_index = lambda p, s: (0, 0, p * steps_per_split + s)

    pred_spec_kwargs = {}
    if pred_buffers != 2:
        # Deeper pipelining for the dominant stream (v5e: hides the DMA bubble).
        pred_spec_kwargs["pipeline_mode"] = pl.Buffered(pred_buffers)

    partials = pl.pallas_call(
        kernel,
        out_shape=jax.ShapeDtypeStruct((num_splits * 2, B, C, _LANE), jnp.float32),
        grid_spec=pltpu.PrefetchScalarGridSpec(
            num_scalar_prefetch=0,
            grid=(num_splits, steps_per_split),
            in_specs=[
                pl.BlockSpec(pred_block, pred_index, **pred_spec_kwargs),
                pl.BlockSpec((B, tile),
                             lambda p, s: (0, p * steps_per_split + s)),
            ],
            out_specs=pl.BlockSpec((2, B, C, _LANE), lambda p, s: (p, 0, 0, 0)),
        ),
        compiler_params=pltpu.CompilerParams(dimension_semantics=dim_semantics),
    )(pred_flat, labels)

    return partials.reshape(num_splits, 2, B, C, _LANE).sum(axis=(0, 4))


def dice_loss(pred, target, *, smooth=SMOOTH, spatial_tile=32768,
              num_splits=None, pred_buffers=None):
    """Dice loss forward.

    pred:   (B, C, D, H, W) probabilities.  Streamed in the caller's dtype — feed
            bf16 straight from the upstream softmax to halve HBM traffic (f32 also
            fine); accumulation is always f32 (bf16 inputs: rtol ~1e-4 vs f32 ref).
    target: (B, D, H, W) integer labels; contract: values in [0, C).  int8 is the
            recommended storage dtype (4x smaller stream, requires C <= 127).
    Call eagerly (not under jit) so chip-specific config can fall back cleanly.
    """
    B, C = pred.shape[0], pred.shape[1]
    spatial = pred.shape[2:]
    S = math.prod(spatial)
    assert target.shape == (B,) + tuple(spatial), (target.shape, pred.shape)
    assert jnp.issubdtype(target.dtype, jnp.integer), target.dtype
    assert not (target.dtype == jnp.int8 and C > 127), "int8 labels need C <= 127"

    labels = target.reshape(B, S)

    # Tile selection: big lane tiles amortise the per-grid-step overhead; the pred
    # block stays ~1-4 MiB (sweep spatial_tile per chip).  No pred padding: the (at
    # most one) ragged tail chunk is masked in-kernel.
    tile = max(_LANE, min(_round_up(spatial_tile, _LANE), _round_up(S, _LANE)))
    steps = _cdiv(S, tile)

    kind = _device_kind()
    if num_splits is None:
        # Only v7x-class chips have two TensorCores worth sharding the reduction over.
        num_splits = 2 if "v7" in kind else 1
    if pred_buffers is None:
        pred_buffers = 3 if ("v5 lite" in kind or "v5e" in kind) else 2

    if num_splits > 1:
        if steps < num_splits:
            num_splits = 1
        elif steps % num_splits:
            # Shrink the tile so the step count becomes a clean multiple of the split.
            t2 = _round_up(_cdiv(S, _round_up(steps, num_splits)), _LANE)
            if _cdiv(S, t2) % num_splits == 0:
                tile, steps = t2, _cdiv(S, t2)
            else:
                num_splits = 1

    dim_sem = ("parallel", "arbitrary")
    if num_splits > 1 and "v7" in kind:
        try:  # only CORE_PARALLEL reliably shards a grid axis across v7x's two TCs
            dim_sem = (pltpu.CORE_PARALLEL, pltpu.ARBITRARY)
        except AttributeError:
            pass

    common = dict(B=B, C=C, S=S)
    try:
        parts = _partial_sums(pred, labels, tile=tile, steps=steps,
                              num_splits=num_splits, dim_semantics=dim_sem,
                              pred_buffers=pred_buffers, flat_rows=True, **common)
    except Exception:
        # Conservative fallback (single split, default buffering, (B, C, S) layout)
        # in case a chip-specific feature above fails to lower on this TPU.
        parts = _partial_sums(pred, labels, tile=tile, steps=_cdiv(S, tile),
                              num_splits=1, dim_semantics=("parallel", "arbitrary"),
                              pred_buffers=2, flat_rows=False, **common)

    inter, psum = parts[0], parts[1]

    # Per-class label histogram == one-hot target sum, computed on the tiny label
    # stream as a fused compare+reduce (dropped from the kernel's hot loop).
    cls_ids = jnp.arange(C, dtype=jnp.int32)
    tsum = jnp.sum(
        (labels.astype(jnp.int32)[:, None, :] == cls_ids[None, :, None])
        .astype(jnp.float32), axis=-1)                                   # (B, C)

    dice = (2.0 * inter + smooth) / (psum + tsum + smooth)
    # dice.mean(dim=1).mean() == full mean for a rectangular (B, C) array.
    return 1.0 - jnp.mean(dice)


def dice_loss_ref(pred, target, smooth=SMOOTH):
    """Pure-JAX reference mirroring the PyTorch forward."""
    C = pred.shape[1]
    pred = pred.astype(jnp.float32)
    onehot = jax.nn.one_hot(target, C, dtype=jnp.float32)        # (B,D,H,W,C)
    onehot = jnp.moveaxis(onehot, -1, 1)                         # (B,C,D,H,W)
    inter = jnp.sum(pred * onehot, axis=(2, 3, 4))
    union = jnp.sum(pred, axis=(2, 3, 4)) + jnp.sum(onehot, axis=(2, 3, 4))
    dice = (2.0 * inter + smooth) / (union + smooth)
    return 1.0 - jnp.mean(jnp.mean(dice, axis=1))


if __name__ == "__main__":
    key = jax.random.PRNGKey(0)
    kp, kt, kp2, kt2 = jax.random.split(key, 4)

    # output_ch = 8 (7 labels + background), batch_size = 2 (cf. config).
    B, C, D, H, W = 2, 8, 8, 8, 8
    logits = jax.random.normal(kp, (B, C, D, H, W), dtype=jnp.float32)
    # Dominant HBM stream kept in bf16 end-to-end (as the upstream softmax emits it);
    # labels stored as int8 (recommended).
    pred = jax.nn.softmax(logits, axis=1).astype(jnp.bfloat16)
    target = jax.random.randint(kt, (B, D, H, W), 0, C, dtype=jnp.int32).astype(jnp.int8)
    ref = jax.block_until_ready(dice_loss_ref(pred.astype(jnp.float32), target))

    # 1) Default config (a single big tile covers the whole 8^3 volume here).
    loss = jax.block_until_ready(dice_loss(pred, target))
    assert jnp.allclose(loss, ref, rtol=1e-4, atol=1e-5), (loss, ref)

    # 2) Multi-step reduction + explicit 2-way split of the reduction grid axis.
    loss2 = jax.block_until_ready(dice_loss(pred, target, spatial_tile=128,
                                            num_splits=2))
    assert jnp.allclose(loss2, ref, rtol=1e-4, atol=1e-5), (loss2, ref)

    # 3) Ragged spatial volume (S = 420, not a multiple of 128): in-kernel tail
    #    masking, no jnp.pad of pred.  float32 pred / int32 labels.
    D2, H2, W2 = 6, 10, 7
    logits2 = jax.random.normal(kp2, (B, C, D2, H2, W2), dtype=jnp.float32)
    pred2 = jax.nn.softmax(logits2, axis=1)
    target2 = jax.random.randint(kt2, (B, D2, H2, W2), 0, C, dtype=jnp.int32)
    ref3 = jax.block_until_ready(dice_loss_ref(pred2, target2))
    loss3 = jax.block_until_ready(dice_loss(pred2, target2, spatial_tile=256))
    assert jnp.allclose(loss3, ref3, rtol=1e-4, atol=1e-5), (loss3, ref3)

    # 4) Ragged volume covered by a single tile (tail path inside the only step).
    loss4 = jax.block_until_ready(dice_loss(pred2, target2))
    assert jnp.allclose(loss4, ref3, rtol=1e-4, atol=1e-5), (loss4, ref3)

    print("KERNEL_OK")
</pallas_src>

<mosaic_0001>
module attributes {stable_mosaic.version = 11 : i64} {
  func.func @_dice_partial_kernel(%arg0: i32, %arg1: i32, %arg2: memref<16x512xbf16, #tpu.memory_space<vmem>>, %arg3: memref<2x512xi8, #tpu.memory_space<vmem>>, %arg4: memref<2x2x8x128xf32, #tpu.memory_space<vmem>>) attributes {dimension_semantics = [#tpu.dimension_semantics<parallel>, #tpu.dimension_semantics<arbitrary>], iteration_bounds = array<i64: 1, 1>, scalar_prefetch = 0 : i64, scratch_operands = 0 : i64, tpu.core_type = #tpu.core_type<tc>, window_params = [{transform_indices = @transform_0, window_bounds = array<i64: 16, 512>}, {transform_indices = @transform_1, window_bounds = array<i64: 2, 512>}, {transform_indices = @transform_2, window_bounds = array<i64: 2, 2, 8, 128>}]} {
    %c0_i32 = arith.constant 0 : i32
    %0 = arith.cmpi eq, %arg1, %c0_i32 : i32
    %1 = arith.extui %0 : i1 to i32
    %c0_i32_0 = arith.constant 0 : i32
    %2 = arith.cmpi ne, %1, %c0_i32_0 : i32
    scf.if %2 {
      %cst_31 = arith.constant 0.000000e+00 : f32
      %81 = vector.broadcast %cst_31 : f32 to vector<2x2x8x128xf32>
      %c0_32 = arith.constant 0 : index
      %c0_33 = arith.constant 0 : index
      %c0_34 = arith.constant 0 : index
      %c0_35 = arith.constant 0 : index
      %82 = vector.load %arg4[%c0_32, %c0_33, %c0_34, %c0_35] : memref<2x2x8x128xf32, #tpu.memory_space<vmem>>, vector<2x2x8x128xf32>
      tpu.vector_store %arg4[%c0_32, %c0_33, %c0_34, %c0_35], %81 {strides = array<i32>} : memref<2x2x8x128xf32, #tpu.memory_space<vmem>>, vector<2x2x8x128xf32>,
    } else {
    }
    %3 = tpu.iota {dimensions = array<i32: 1>} : vector<2x8x128xi32>
    %cst = arith.constant 0.000000e+00 : f32
    %4 = vector.broadcast %cst : f32 to vector<2x8x128xf32>
    %c0_i32_1 = arith.constant 0 : i32
    %c128_i32 = arith.constant 128 : i32
    %5 = arith.muli %c0_i32_1, %c128_i32 : i32
    %6 = tpu.assume_multiple %5, 128 : i32
    %c0 = arith.constant 0 : index
    %7 = arith.index_cast %6 : i32 to index
    %8 = vector.load %arg2[%c0, %7] : memref<16x512xbf16, #tpu.memory_space<vmem>>, vector<16x128xbf16>
    %9 = arith.extf %8 : vector<16x128xbf16> to vector<16x128xf32>
    %10 = vector.shape_cast %9 : vector<16x128xf32> to vector<2x8x128xf32>
    %c0_2 = arith.constant 0 : index
    %11 = arith.index_cast %6 : i32 to index
    %12 = vector.load %arg3[%c0_2, %11] : memref<2x512xi8, #tpu.memory_space<vmem>>, vector<2x128xi8>
    %13 = arith.extsi %12 : vector<2x128xi8> to vector<2x128xi32>
    %14 = vector.shape_cast %13 : vector<2x128xi32> to vector<2x1x128xi32>
    %15 = vector.broadcast %14 : vector<2x1x128xi32> to vector<2x8x128xi32>
    %16 = arith.cmpi eq, %15, %3 : vector<2x8x128xi32>
    %cst_3 = arith.constant 0.000000e+00 : f32
    %17 = vector.broadcast %cst_3 : f32 to vector<2x8x128xf32>
    %18 = arith.select %16, %10, %17 : vector<2x8x128xi1>, vector<2x8x128xf32>
    %19 = arith.addf %4, %18 : vector<2x8x128xf32>
    %20 = arith.addf %4, %10 : vector<2x8x128xf32>
    %c1_i32 = arith.constant 1 : i32
    %c128_i32_4 = arith.constant 128 : i32
    %21 = arith.muli %c1_i32, %c128_i32_4 : i32
    %22 = tpu.assume_multiple %21, 128 : i32
    %c0_5 = arith.constant 0 : index
    %23 = arith.index_cast %22 : i32 to index
    %24 = vector.load %arg2[%c0_5, %23] : memref<16x512xbf16, #tpu.memory_space<vmem>>, vector<16x128xbf16>
    %25 = arith.extf %24 : vector<16x128xbf16> to vector<16x128xf32>
    %26 = vector.shape_cast %25 : vector<16x128xf32> to vector<2x8x128xf32>
    %c0_6 = arith.constant 0 : index
    %27 = arith.index_cast %22 : i32 to index
    %28 = vector.load %arg3[%c0_6, %27] : memref<2x512xi8, #tpu.memory_space<vmem>>, vector<2x128xi8>
    %29 = arith.extsi %28 : vector<2x128xi8> to vector<2x128xi32>
    %30 = vector.shape_cast %29 : vector<2x128xi32> to vector<2x1x128xi32>
    %31 = vector.broadcast %30 : vector<2x1x128xi32> to vector<2x8x128xi32>
    %32 = arith.cmpi eq, %31, %3 : vector<2x8x128xi32>
    %cst_7 = arith.constant 0.000000e+00 : f32
    %33 = vector.broadcast %cst_7 : f32 to vector<2x8x128xf32>
    %34 = arith.select %32, %26, %33 : vector<2x8x128xi1>, vector<2x8x128xf32>
    %35 = arith.addf %19, %34 : vector<2x8x128xf32>
    %36 = arith.addf %20, %26 : vector<2x8x128xf32>
    %c2_i32 = arith.constant 2 : i32
    %c128_i32_8 = arith.constant 128 : i32
    %37 = arith.muli %c2_i32, %c128_i32_8 : i32
    %38 = tpu.assume_multiple %37, 128 : i32
    %c0_9 = arith.constant 0 : index
    %39 = arith.index_cast %38 : i32 to index
    %40 = vector.load %arg2[%c0_9, %39] : memref<16x512xbf16, #tpu.memory_space<vmem>>, vector<16x128xbf16>
    %41 = arith.extf %40 : vector<16x128xbf16> to vector<16x128xf32>
    %42 = vector.shape_cast %41 : vector<16x128xf32> to vector<2x8x128xf32>
    %c0_10 = arith.constant 0 : index
    %43 = arith.index_cast %38 : i32 to index
    %44 = vector.load %arg3[%c0_10, %43] : memref<2x512xi8, #tpu.memory_space<vmem>>, vector<2x128xi8>
    %45 = arith.extsi %44 : vector<2x128xi8> to vector<2x128xi32>
    %46 = vector.shape_cast %45 : vector<2x128xi32> to vector<2x1x128xi32>
    %47 = vector.broadcast %46 : vector<2x1x128xi32> to vector<2x8x128xi32>
    %48 = arith.cmpi eq, %47, %3 : vector<2x8x128xi32>
    %cst_11 = arith.constant 0.000000e+00 : f32
    %49 = vector.broadcast %cst_11 : f32 to vector<2x8x128xf32>
    %50 = arith.select %48, %42, %49 : vector<2x8x128xi1>, vector<2x8x128xf32>
    %51 = arith.addf %35, %50 : vector<2x8x128xf32>
    %52 = arith.addf %36, %42 : vector<2x8x128xf32>
    %c3_i32 = arith.constant 3 : i32
    %c128_i32_12 = arith.constant 128 : i32
    %53 = arith.muli %c3_i32, %c128_i32_12 : i32
    %54 = tpu.assume_multiple %53, 128 : i32
    %c0_13 = arith.constant 0 : index
    %55 = arith.index_cast %54 : i32 to index
    %56 = vector.load %arg2[%c0_13, %55] : memref<16x512xbf16, #tpu.memory_space<vmem>>, vector<16x128xbf16>
    %57 = arith.extf %56 : vector<16x128xbf16> to vector<16x128xf32>
    %58 = vector.shape_cast %57 : vector<16x128xf32> to vector<2x8x128xf32>
    %c0_14 = arith.constant 0 : index
    %59 = arith.index_cast %54 : i32 to index
    %60 = vector.load %arg3[%c0_14, %59] : memref<2x512xi8, #tpu.memory_space<vmem>>, vector<2x128xi8>
    %61 = arith.extsi %60 : vector<2x128xi8> to vector<2x128xi32>
    %62 = vector.shape_cast %61 : vector<2x128xi32> to vector<2x1x128xi32>
    %63 = vector.broadcast %62 : vector<2x1x128xi32> to vector<2x8x128xi32>
    %64 = arith.cmpi eq, %63, %3 : vector<2x8x128xi32>
    %cst_15 = arith.constant 0.000000e+00 : f32
    %65 = vector.broadcast %cst_15 : f32 to vector<2x8x128xf32>
    %66 = arith.select %64, %58, %65 : vector<2x8x128xi1>, vector<2x8x128xf32>
    %67 = arith.addf %51, %66 : vector<2x8x128xf32>
    %68 = arith.addf %52, %58 : vector<2x8x128xf32>
    %c4_i32 = arith.constant 4 : i32
    %c0_16 = arith.constant 0 : index
    %c0_17 = arith.constant 0 : index
    %c0_18 = arith.constant 0 : index
    %c0_19 = arith.constant 0 : index
    %69 = vector.load %arg4[%c0_16, %c0_17, %c0_18, %c0_19] : memref<2x2x8x128xf32, #tpu.memory_space<vmem>>, vector<1x2x8x128xf32>
    %70 = vector.shape_cast %69 : vector<1x2x8x128xf32> to vector<2x8x128xf32>
    %71 = arith.addf %70, %67 : vector<2x8x128xf32>
    %c0_20 = arith.constant 0 : index
    %c0_21 = arith.constant 0 : index
    %c0_22 = arith.constant 0 : index
    %c0_23 = arith.constant 0 : index
    %72 = vector.load %arg4[%c0_20, %c0_21, %c0_22, %c0_23] : memref<2x2x8x128xf32, #tpu.memory_space<vmem>>, vector<1x2x8x128xf32>
    %73 = vector.shape_cast %72 : vector<1x2x8x128xf32> to vector<2x8x128xf32>
    %74 = vector.shape_cast %71 : vector<2x8x128xf32> to vector<1x2x8x128xf32>
    tpu.vector_store %arg4[%c0_20, %c0_21, %c0_22, %c0_23], %74 {strides = array<i32>} : memref<2x2x8x128xf32, #tpu.memory_space<vmem>>, vector<1x2x8x128xf32>,
    %c1 = arith.constant 1 : index
    %c0_24 = arith.constant 0 : index
    %c0_25 = arith.constant 0 : index
    %c0_26 = arith.constant 0 : index
    %75 = vector.load %arg4[%c1, %c0_24, %c0_25, %c0_26] : memref<2x2x8x128xf32, #tpu.memory_space<vmem>>, vector<1x2x8x128xf32>
    %76 = vector.shape_cast %75 : vector<1x2x8x128xf32> to vector<2x8x128xf32>
    %77 = arith.addf %76, %68 : vector<2x8x128xf32>
    %c1_27 = arith.constant 1 : index
    %c0_28 = arith.constant 0 : index
    %c0_29 = arith.constant 0 : index
    %c0_30 = arith.constant 0 : index
    %78 = vector.load %arg4[%c1_27, %c0_28, %c0_29, %c0_30] : memref<2x2x8x128xf32, #tpu.memory_space<vmem>>, vector<1x2x8x128xf32>
    %79 = vector.shape_cast %78 : vector<1x2x8x128xf32> to vector<2x8x128xf32>
    %80 = vector.shape_cast %77 : vector<2x8x128xf32> to vector<1x2x8x128xf32>
    tpu.vector_store %arg4[%c1_27, %c0_28, %c0_29, %c0_30], %80 {strides = array<i32>} : memref<2x2x8x128xf32, #tpu.memory_space<vmem>>, vector<1x2x8x128xf32>,
    return
  }
  func.func @transform_0(%arg0: i32, %arg1: i32) -> (i32, i32) {
    %c1_i32 = arith.constant 1 : i32
    %0 = arith.muli %arg0, %c1_i32 : i32
    %1 = arith.addi %0, %arg1 : i32
    %c0_i32 = arith.constant 0 : i32
    %c0_i32_0 = arith.constant 0 : i32
    return %c0_i32, %1 : i32, i32
  }
  func.func @transform_1(%arg0: i32, %arg1: i32) -> (i32, i32) {
    %c1_i32 = arith.constant 1 : i32
    %0 = arith.muli %arg0, %c1_i32 : i32
    %1 = arith.addi %0, %arg1 : i32
    %c0_i32 = arith.constant 0 : i32
    %c0_i32_0 = arith.constant 0 : i32
    return %c0_i32, %1 : i32, i32
  }
  func.func @transform_2(%arg0: i32, %arg1: i32) -> (i32, i32, i32, i32) {
    %c0_i32 = arith.constant 0 : i32
    %c0_i32_0 = arith.constant 0 : i32
    %c0_i32_1 = arith.constant 0 : i32
    %c0_i32_2 = arith.constant 0 : i32
    return %arg0, %c0_i32, %c0_i32_0, %c0_i32_1 : i32, i32, i32, i32
  }
}

module attributes {stable_mosaic.version = 11 : i64} {
  func.func @_dice_partial_kernel(%arg0: i32, %arg1: i32, %arg2: memref<2x8x512xbf16, #tpu.memory_space<vmem>>, %arg3: memref<2x512xi8, #tpu.memory_space<vmem>>, %arg4: memref<2x2x8x128xf32, #tpu.memory_space<vmem>>) attributes {dimension_semantics = [#tpu.dimension_semantics<parallel>, #tpu.dimension_semantics<arbitrary>], iteration_bounds = array<i64: 1, 1>, scalar_prefetch = 0 : i64, scratch_operands = 0 : i64, tpu.core_type = #tpu.core_type<tc>, window_params = [{transform_indices = @transform_0, window_bounds = array<i64: 2, 8, 512>}, {transform_indices = @transform_1, window_bounds = array<i64: 2, 512>}, {transform_indices = @transform_2, window_bounds = array<i64: 2, 2, 8, 128>}]} {
    %c0_i32 = arith.constant 0 : i32
    %0 = arith.cmpi eq, %arg1, %c0_i32 : i32
    %1 = arith.extui %0 : i1 to i32
    %c0_i32_0 = arith.constant 0 : i32
    %2 = arith.cmpi ne, %1, %c0_i32_0 : i32
    scf.if %2 {
      %cst_35 = arith.constant 0.000000e+00 : f32
      %77 = vector.broadcast %cst_35 : f32 to vector<2x2x8x128xf32>
      %c0_36 = arith.constant 0 : index
      %c0_37 = arith.constant 0 : index
      %c0_38 = arith.constant 0 : index
      %c0_39 = arith.constant 0 : index
      %78 = vector.load %arg4[%c0_36, %c0_37, %c0_38, %c0_39] : memref<2x2x8x128xf32, #tpu.memory_space<vmem>>, vector<2x2x8x128xf32>
      tpu.vector_store %arg4[%c0_36, %c0_37, %c0_38, %c0_39], %77 {strides = array<i32>} : memref<2x2x8x128xf32, #tpu.memory_space<vmem>>, vector<2x2x8x128xf32>,
    } else {
    }
    %3 = tpu.iota {dimensions = array<i32: 1>} : vector<2x8x128xi32>
    %cst = arith.constant 0.000000e+00 : f32
    %4 = vector.broadcast %cst : f32 to vector<2x8x128xf32>
    %c0_i32_1 = arith.constant 0 : i32
    %c128_i32 = arith.constant 128 : i32
    %5 = arith.muli %c0_i32_1, %c128_i32 : i32
    %6 = tpu.assume_multiple %5, 128 : i32
    %c0 = arith.constant 0 : index
    %c0_2 = arith.constant 0 : index
    %7 = arith.index_cast %6 : i32 to index
    %8 = vector.load %arg2[%c0, %c0_2, %7] : memref<2x8x512xbf16, #tpu.memory_space<vmem>>, vector<2x8x128xbf16>
    %9 = arith.extf %8 : vector<2x8x128xbf16> to vector<2x8x128xf32>
    %c0_3 = arith.constant 0 : index
    %10 = arith.index_cast %6 : i32 to index
    %11 = vector.load %arg3[%c0_3, %10] : memref<2x512xi8, #tpu.memory_space<vmem>>, vector<2x128xi8>
    %12 = arith.extsi %11 : vector<2x128xi8> to vector<2x128xi32>
    %13 = vector.shape_cast %12 : vector<2x128xi32> to vector<2x1x128xi32>
    %14 = vector.broadcast %13 : vector<2x1x128xi32> to vector<2x8x128xi32>
    %15 = arith.cmpi eq, %14, %3 : vector<2x8x128xi32>
    %cst_4 = arith.constant 0.000000e+00 : f32
    %16 = vector.broadcast %cst_4 : f32 to vector<2x8x128xf32>
    %17 = arith.select %15, %9, %16 : vector<2x8x128xi1>, vector<2x8x128xf32>
    %18 = arith.addf %4, %17 : vector<2x8x128xf32>
    %19 = arith.addf %4, %9 : vector<2x8x128xf32>
    %c1_i32 = arith.constant 1 : i32
    %c128_i32_5 = arith.constant 128 : i32
    %20 = arith.muli %c1_i32, %c128_i32_5 : i32
    %21 = tpu.assume_multiple %20, 128 : i32
    %c0_6 = arith.constant 0 : index
    %c0_7 = arith.constant 0 : index
    %22 = arith.index_cast %21 : i32 to index
    %23 = vector.load %arg2[%c0_6, %c0_7, %22] : memref<2x8x512xbf16, #tpu.memory_space<vmem>>, vector<2x8x128xbf16>
    %24 = arith.extf %23 : vector<2x8x128xbf16> to vector<2x8x128xf32>
    %c0_8 = arith.constant 0 : index
    %25 = arith.index_cast %21 : i32 to index
    %26 = vector.load %arg3[%c0_8, %25] : memref<2x512xi8, #tpu.memory_space<vmem>>, vector<2x128xi8>
    %27 = arith.extsi %26 : vector<2x128xi8> to vector<2x128xi32>
    %28 = vector.shape_cast %27 : vector<2x128xi32> to vector<2x1x128xi32>
    %29 = vector.broadcast %28 : vector<2x1x128xi32> to vector<2x8x128xi32>
    %30 = arith.cmpi eq, %29, %3 : vector<2x8x128xi32>
    %cst_9 = arith.constant 0.000000e+00 : f32
    %31 = vector.broadcast %cst_9 : f32 to vector<2x8x128xf32>
    %32 = arith.select %30, %24, %31 : vector<2x8x128xi1>, vector<2x8x128xf32>
    %33 = arith.addf %18, %32 : vector<2x8x128xf32>
    %34 = arith.addf %19, %24 : vector<2x8x128xf32>
    %c2_i32 = arith.constant 2 : i32
    %c128_i32_10 = arith.constant 128 : i32
    %35 = arith.muli %c2_i32, %c128_i32_10 : i32
    %36 = tpu.assume_multiple %35, 128 : i32
    %c0_11 = arith.constant 0 : index
    %c0_12 = arith.constant 0 : index
    %37 = arith.index_cast %36 : i32 to index
    %38 = vector.load %arg2[%c0_11, %c0_12, %37] : memref<2x8x512xbf16, #tpu.memory_space<vmem>>, vector<2x8x128xbf16>
    %39 = arith.extf %38 : vector<2x8x128xbf16> to vector<2x8x128xf32>
    %c0_13 = arith.constant 0 : index
    %40 = arith.index_cast %36 : i32 to index
    %41 = vector.load %arg3[%c0_13, %40] : memref<2x512xi8, #tpu.memory_space<vmem>>, vector<2x128xi8>
    %42 = arith.extsi %41 : vector<2x128xi8> to vector<2x128xi32>
    %43 = vector.shape_cast %42 : vector<2x128xi32> to vector<2x1x128xi32>
    %44 = vector.broadcast %43 : vector<2x1x128xi32> to vector<2x8x128xi32>
    %45 = arith.cmpi eq, %44, %3 : vector<2x8x128xi32>
    %cst_14 = arith.constant 0.000000e+00 : f32
    %46 = vector.broadcast %cst_14 : f32 to vector<2x8x128xf32>
    %47 = arith.select %45, %39, %46 : vector<2x8x128xi1>, vector<2x8x128xf32>
    %48 = arith.addf %33, %47 : vector<2x8x128xf32>
    %49 = arith.addf %34, %39 : vector<2x8x128xf32>
    %c3_i32 = arith.constant 3 : i32
    %c128_i32_15 = arith.constant 128 : i32
    %50 = arith.muli %c3_i32, %c128_i32_15 : i32
    %51 = tpu.assume_multiple %50, 128 : i32
    %c0_16 = arith.constant 0 : index
    %c0_17 = arith.constant 0 : index
    %52 = arith.index_cast %51 : i32 to index
    %53 = vector.load %arg2[%c0_16, %c0_17, %52] : memref<2x8x512xbf16, #tpu.memory_space<vmem>>, vector<2x8x128xbf16>
    %54 = arith.extf %53 : vector<2x8x128xbf16> to vector<2x8x128xf32>
    %c0_18 = arith.constant 0 : index
    %55 = arith.index_cast %51 : i32 to index
    %56 = vector.load %arg3[%c0_18, %55] : memref<2x512xi8, #tpu.memory_space<vmem>>, vector<2x128xi8>
    %57 = arith.extsi %56 : vector<2x128xi8> to vector<2x128xi32>
    %58 = vector.shape_cast %57 : vector<2x128xi32> to vector<2x1x128xi32>
    %59 = vector.broadcast %58 : vector<2x1x128xi32> to vector<2x8x128xi32>
    %60 = arith.cmpi eq, %59, %3 : vector<2x8x128xi32>
    %cst_19 = arith.constant 0.000000e+00 : f32
    %61 = vector.broadcast %cst_19 : f32 to vector<2x8x128xf32>
    %62 = arith.select %60, %54, %61 : vector<2x8x128xi1>, vector<2x8x128xf32>
    %63 = arith.addf %48, %62 : vector<2x8x128xf32>
    %64 = arith.addf %49, %54 : vector<2x8x128xf32>
    %c4_i32 = arith.constant 4 : i32
    %c0_20 = arith.constant 0 : index
    %c0_21 = arith.constant 0 : index
    %c0_22 = arith.constant 0 : index
    %c0_23 = arith.constant 0 : index
    %65 = vector.load %arg4[%c0_20, %c0_21, %c0_22, %c0_23] : memref<2x2x8x128xf32, #tpu.memory_space<vmem>>, vector<1x2x8x128xf32>
    %66 = vector.shape_cast %65 : vector<1x2x8x128xf32> to vector<2x8x128xf32>
    %67 = arith.addf %66, %63 : vector<2x8x128xf32>
    %c0_24 = arith.constant 0 : index
    %c0_25 = arith.constant 0 : index
    %c0_26 = arith.constant 0 : index
    %c0_27 = arith.constant 0 : index
    %68 = vector.load %arg4[%c0_24, %c0_25, %c0_26, %c0_27] : memref<2x2x8x128xf32, #tpu.memory_space<vmem>>, vector<1x2x8x128xf32>
    %69 = vector.shape_cast %68 : vector<1x2x8x128xf32> to vector<2x8x128xf32>
    %70 = vector.shape_cast %67 : vector<2x8x128xf32> to vector<1x2x8x128xf32>
    tpu.vector_store %arg4[%c0_24, %c0_25, %c0_26, %c0_27], %70 {strides = array<i32>} : memref<2x2x8x128xf32, #tpu.memory_space<vmem>>, vector<1x2x8x128xf32>,
    %c1 = arith.constant 1 : index
    %c0_28 = arith.constant 0 : index
    %c0_29 = arith.constant 0 : index
    %c0_30 = arith.constant 0 : index
    %71 = vector.load %arg4[%c1, %c0_28, %c0_29, %c0_30] : memref<2x2x8x128xf32, #tpu.memory_space<vmem>>, vector<1x2x8x128xf32>
    %72 = vector.shape_cast %71 : vector<1x2x8x128xf32> to vector<2x8x128xf32>
    %73 = arith.addf %72, %64 : vector<2x8x128xf32>
    %c1_31 = arith.constant 1 : index
    %c0_32 = arith.constant 0 : index
    %c0_33 = arith.constant 0 : index
    %c0_34 = arith.constant 0 : index
    %74 = vector.load %arg4[%c1_31, %c0_32, %c0_33, %c0_34] : memref<2x2x8x128xf32, #tpu.memory_space<vmem>>, vector<1x2x8x128xf32>
    %75 = vector.shape_cast %74 : vector<1x2x8x128xf32> to vector<2x8x128xf32>
    %76 = vector.shape_cast %73 : vector<2x8x128xf32> to vector<1x2x8x128xf32>
    tpu.vector_store %arg4[%c1_31, %c0_32, %c0_33, %c0_34], %76 {strides = array<i32>} : memref<2x2x8x128xf32, #tpu.memory_space<vmem>>, vector<1x2x8x128xf32>,
    return
  }
  func.func @transform_0(%arg0: i32, %arg1: i32) -> (i32, i32, i32) {
    %c1_i32 = arith.constant 1 : i32
    %0 = arith.muli %arg0, %c1_i32 : i32
    %1 = arith.addi %0, %arg1 : i32
    %c0_i32 = arith.constant 0 : i32
    %c0_i32_0 = arith.constant 0 : i32
    %c0_i32_1 = arith.constant 0 : i32
    return %c0_i32, %c0_i32_0, %1 : i32, i32, i32
  }
  func.func @transform_1(%arg0: i32, %arg1: i32) -> (i32, i32) {
    %c1_i32 = arith.constant 1 : i32
    %0 = arith.muli %arg0, %c1_i32 : i32
    %1 = arith.addi %0, %arg1 : i32
    %c0_i32 = arith.constant 0 : i32
    %c0_i32_0 = arith.constant 0 : i32
    return %c0_i32, %1 : i32, i32
  }
  func.func @transform_2(%arg0: i32, %arg1: i32) -> (i32, i32, i32, i32) {
    %c0_i32 = arith.constant 0 : i32
    %c0_i32_0 = arith.constant 0 : i32
    %c0_i32_1 = arith.constant 0 : i32
    %c0_i32_2 = arith.constant 0 : i32
    return %arg0, %c0_i32, %c0_i32_0, %c0_i32_1 : i32, i32, i32, i32
  }
}

</mosaic_0001>

<bundles_post_ra>
// kernel: tpu_custom_call.1
= control target key start
LH: loop header
LB: loop body
LE: loop exit
PB: predicated region body
PF: predicated region fallthrough
CT: control target
= control target key end

     0   :  { %7 = vsyncpa [#allocation3], 0  ;;  %s429_s0 = inlined_call_operand.hbm [shape: bf16[16,512], index: 0, kind: input, shape index: {}]   ;;  %s430_s1 = inlined_call_operand.hbm [shape: s8[2,512], index: 1, kind: input, shape index: {}]   ;;  %s431_s2 = inlined_call_operand.hbm [shape: f32[2,2,8,128], index: 2, kind: output, shape index: {}]  }
   0x1   :  { %8 = vsyncpa [#allocation6], 0 }
   0x2   :  { %9 = vsyncpa [#allocation4], 0  ;;  %s354_s9 = smov [#allocation2]   ;;  %s282_s13 = scalar_lea.hbm %s429_s0, 512 }
   0x3   :  { %s19_s10 = sshll.u32 %s354_s9, 4  ;;  %p283_p0 = scmp.ne.s32.totalorder %s429_s0, %s282_s13  ;;  %s20_s10 = int_to_ptr.vmem [resolvable:$true] %s19_s10 }
   0x4   :  { %p286_p1 = scmp.lt.u32.totalorder %s282_s13, %s429_s0 }
   0x6   :  { %p288_p2 = pnand %p286_p1, %p283_p0 }
   0x8   :  { %291 = shalt.err (!%p288_p2)
}
   0x9   :  { %s292_s18 = scalar_lea.vmem %s20_s10, 512  ;;  %p297_p4 = scmp.lt.s32.totalorder %s20_s10, %s20_s10 }
   0xa   :  { %p293_p3 = scmp.ne.s32.totalorder %s20_s10, %s292_s18  ;;  %p298_p5 = scmp.lt.s32.totalorder %s292_s18, %s292_s18 }
   0xc   :  { %p299_p6 = por %p298_p5, %p297_p4 }
   0xe   :  { %p300_p7 = pnand %p299_p6, %p293_p3 }
  0x10   :  { %303 = shalt.err (!%p300_p7)
}
  0x11   :  { %s355_s19 = smov 256   ;;  %s356_s20 = smov 16  }
  0x12   :  { %25 = dma.hbm_to_vmem [thread:$0]  %s429_s0, 512, %s20_s10, [#allocation3], %s355_s19, %s355_s19, %s356_s20  }
  0x13   :  { %s357_s23 = smov [#allocation5]   ;;  %s304_s27 = scalar_lea.hbm %s430_s1, 64 }
  0x14   :  { %s36_s24 = sshll.u32 %s357_s23, 4  ;;  %p305_p8 = scmp.ne.s32.totalorder %s430_s1, %s304_s27  ;;  %s37_s24 = int_to_ptr.vmem [resolvable:$true] %s36_s24 }
  0x15   :  { %p308_p9 = scmp.lt.u32.totalorder %s304_s27, %s430_s1 }
  0x17   :  { %p310_p10 = pnand %p308_p9, %p305_p8 }
  0x19   :  { %313 = shalt.err (!%p310_p10)
}
  0x1a   :  { %s314_s4 = scalar_lea.vmem %s37_s24, 64  ;;  %p319_p12 = scmp.lt.s32.totalorder %s37_s24, %s37_s24 }
  0x1b   :  { %p315_p11 = scmp.ne.s32.totalorder %s37_s24, %s314_s4  ;;  %p320_p13 = scmp.lt.s32.totalorder %s314_s4, %s314_s4 }
  0x1d   :  { %p321_p0 = por %p320_p13, %p319_p12 }
  0x1f   :  { %p322_p1 = pnand %p321_p0, %p315_p11 }
  0x21   :  { %325 = shalt.err (!%p322_p1)
}
  0x22   :  { %39 = dma.hbm_to_vmem [thread:$0]  %s430_s1, 64, %s37_s24, [#allocation6]  }
  0x23   :  { %348 = dma.done.wait [#allocation3], 512  }
  0x24   :  { %349 = vsyncadd [#allocation3], 4294966784 }
  0x25   :  { %350 = dma.done.wait [#allocation6], 64  }
  0x26   :  { %351 = vsyncadd [#allocation6], 4294967232  ;;  %v58_v0 = vlaneseq  ;;  %v358_v1 = vmov 1966171168   ;;  %v60_v6 = vld [vmem:[#allocation2] sm:$0xff]   ;;  %v405_v14 = vld [vmem:[#allocation2 + $0x8] sm:$0xff]  }
  0x27   :  { %v67_v2 = vunpack.c.l.s4 %v358_v1  ;;  %v64_v7 = vld [vmem:[#allocation5] sm:$0x1]  ;;  %v110_v9 = vld [vmem:[#allocation5 + $0x1] sm:$0x1]  ;;  %v62_v10 = vunpack.c.l.bf16 %v60_v6  ;;  %v107_v12 = vunpack.c.h.bf16 %v60_v6  ;;  %v156_v15 = vld [vmem:[#allocation5 + $0x2] sm:$0x1]  ;;  %v153_v17 = vunpack.c.l.bf16 %v405_v14 }
  0x28   :  { %v401_v3 = vshrl.u32 %v58_v0, 7  ;;  %v65_v11 = vunpack.c.0.s8 %v64_v7  ;;  %v111_v13 = vunpack.c.0.s8 %v110_v9  ;;  %v202_v16 = vld [vmem:[#allocation5 + $0x3] sm:$0x1]  ;;  %v157_v18 = vunpack.c.0.s8 %v156_v15  ;;  %v61_v21 = vld [vmem:[#allocation2 + $0x10] sm:$0xff]   ;;  %v152_v22 = vld [vmem:[#allocation2 + $0x18] sm:$0xff]   ;;  %s359_s1 = smov [#allocation7]  }
  0x29   :  { %v68_v4 = vunpack.c.0.s8 %v67_v2  ;;  %v199_v19 = vunpack.c.h.bf16 %v405_v14  ;;  %v203_v20 = vunpack.c.0.s8 %v202_v16  ;;  %v63_v25 = vunpack.c.l.bf16 %v61_v21  ;;  %s260_s6 = sshll.u32 %s359_s1, 4  ;;  %s261_s6 = int_to_ptr.vmem [resolvable:$true] %s260_s6 }
  0x2a   :  { %v90_v8 = vsub.s32 0, %v401_v3  ;;  %v108_v26 = vunpack.c.h.bf16 %v61_v21  ;;  %v154_v29 = vunpack.c.l.bf16 %v152_v22  ;;  %v200_v30 = vunpack.c.h.bf16 %v152_v22  ;;  %s326_s7 = scalar_lea.vmem %s261_s6, 512  ;;  %p331_p3 = scmp.lt.s32.totalorder %s261_s6, %s261_s6 }
  0x2b   :  { %v71_v5 = vsub.s32 %v68_v4, %v401_v3  ;;  %v148_v59 = vadd.f32 %v107_v12, %v62_v10  ;;  %p327_p2 = scmp.ne.s32.totalorder %s261_s6, %s326_s7  ;;  %p332_p4 = scmp.lt.s32.totalorder %s326_s7, %s326_s7 }
  0x2c   :  { %v149_v60 = vadd.f32 %v108_v26, %v63_v25 }
  0x2d   :  { %v72_v23 = vrot.slane %v65_v11, %v71_v5  ;;  %v118_v24 = vrot.slane %v111_v13, %v71_v5  ;;  %v164_v27 = vrot.slane %v157_v18, %v71_v5  ;;  %v210_v28 = vrot.slane %v203_v20, %v71_v5  ;;  %p333_p5 = por %p332_p4, %p331_p3 }
  0x2e   :  { %v194_v1 = vadd.f32 %v153_v17, %v148_v59  ;;  %v195_v4 = vadd.f32 %v154_v29, %v149_v60 }
  0x2f   :  { %v80_v31 = vrot.slane %v72_v23, %v71_v5  ;;  %v126_v32 = vrot.slane %v118_v24, %v71_v5  ;;  %v73_v33 = vcombine.high %v72_v23, %v72_v23  ;;  %v119_v34 = vcombine.high %v118_v24, %v118_v24  ;;  %p334_p6 = pnand %p333_p5, %p327_p2 }
  0x30   :  { %v172_v35 = vrot.slane %v164_v27, %v71_v5  ;;  %v218_v36 = vrot.slane %v210_v28, %v71_v5  ;;  %v165_v37 = vcombine.high %v164_v27, %v164_v27  ;;  %v211_v38 = vcombine.high %v210_v28, %v210_v28 }
  0x31   :  { %v91_v39 = vrot.slane %v80_v31, %v90_v8  ;;  %v137_v40 = vrot.slane %v126_v32, %v90_v8  ;;  %v87_v41 = vrot.slane %v73_v33, %v71_v5  ;;  %v133_v42 = vrot.slane %v119_v34, %v71_v5 }
  0x32   :  { %v183_v43 = vrot.slane %v172_v35, %v90_v8  ;;  %v229_v44 = vrot.slane %v218_v36, %v90_v8  ;;  %v179_v45 = vrot.slane %v165_v37, %v71_v5  ;;  %v225_v46 = vrot.slane %v211_v38, %v71_v5 }
  0x33   :  { %vm96_vm0 = vcmp.eq.s32.totalorder %v91_v39, %v401_v3  ;;  %vm142_vm1 = vcmp.eq.s32.totalorder %v137_v40, %v401_v3  ;;  %v95_v47 = vrot.slane %v87_v41, %v90_v8  ;;  %v141_v48 = vrot.slane %v133_v42, %v90_v8 }
  0x34   :  { %v98_v49 = vsel %vm96_vm0, %v62_v10, 0.0  ;;  %v144_v50 = vsel %vm142_vm1, %v107_v12, 0.0  ;;  %vm188_vm2 = vcmp.eq.s32.totalorder %v183_v43, %v401_v3  ;;  %vm234_vm3 = vcmp.eq.s32.totalorder %v229_v44, %v401_v3 }
  0x35   :  { %v146_v51 = vadd.f32 %v144_v50, %v98_v49  ;;  %v190_v52 = vsel %vm188_vm2, %v153_v17, 0.0  ;;  %v236_v53 = vsel %vm234_vm3, %v199_v19, 0.0  ;;  %vm97_vm4 = vcmp.eq.s32.totalorder %v95_v47, %v401_v3 }
  0x36   :  { %v99_v54 = vsel %vm97_vm4, %v63_v25, 0.0  ;;  %vm143_vm5 = vcmp.eq.s32.totalorder %v141_v48, %v401_v3  ;;  %v187_v55 = vrot.slane %v179_v45, %v90_v8  ;;  %v233_v56 = vrot.slane %v225_v46, %v90_v8 }
  0x37   :  { %v192_v57 = vadd.f32 %v190_v52, %v146_v51  ;;  %v145_v58 = vsel %vm143_vm5, %v108_v26, 0.0  ;;  %v240_v5 = vadd.f32 %v199_v19, %v194_v1  ;;  %v241_v7 = vadd.f32 %v200_v30, %v195_v4 }
  0x38   :  { %v147_v61 = vadd.f32 %v145_v58, %v99_v54  ;;  %vm189_vm6 = vcmp.eq.s32.totalorder %v187_v55, %v401_v3  ;;  %vm235_vm7 = vcmp.eq.s32.totalorder %v233_v56, %v401_v3 }
  0x39   :  { %v238_v62 = vadd.f32 %v236_v53, %v192_v57  ;;  %v191_v63 = vsel %vm189_vm6, %v154_v29, 0.0  ;;  %v237_v0 = vsel %vm235_vm7, %v200_v30, 0.0  ;;  %253 = vst [vmem:[#allocation7 + $0x10] sm:$0xff] %v240_v5  ;;  %254 = vst [vmem:[#allocation7 + $0x18] sm:$0xff] %v241_v7 }
  0x3a   :  { %v193_v2 = vadd.f32 %v191_v63, %v147_v61 }
  0x3b   :  { %246 = vst [vmem:[#allocation7] sm:$0xff] %v238_v62 }
  0x3c   :  { %v239_v6 = vadd.f32 %v237_v0, %v193_v2 }
  0x3e   :  { %247 = vst [vmem:[#allocation7 + $0x8] sm:$0xff] %v239_v6 }
  0x3f   :  { %337 = shalt.err (!%p334_p6)
}
  0x40   :  { %s338_s10 = scalar_lea.hbm %s431_s2, 512 }
  0x41   :  { %p339_p7 = scmp.ne.s32.totalorder %s431_s2, %s338_s10  ;;  %p342_p8 = scmp.lt.u32.totalorder %s338_s10, %s431_s2 }
  0x43   :  { %p344_p9 = pnand %p342_p8, %p339_p7 }
  0x45   :  { %347 = shalt.err (!%p344_p9)
}
  0x46   :  { %s360_s15 = smov 128   ;;  %s361_s16 = smov 8  }
  0x47   :  { %266 = dma.vmem_to_hbm [thread:$0]  %s261_s6, 512, %s431_s2, [#allocation4], %s360_s15, %s360_s15, %s361_s16  }
  0x48   :  { %352 = dma.done.wait [#allocation4], 512  }
  0x49   :  { %353 = vsyncadd [#allocation4], 4294966784 }
  0x4a   :  { %270 = vsyncpa [#allocation3], 1 }
  0x4b   :  { %271 = vsyncpa [#allocation6], 1 }
  0x4c   :  { %272 = vsyncpa [#allocation4], 1 }

// kernel: tpu_custom_call.1
= control target key start
LH: loop header
LB: loop body
LE: loop exit
PB: predicated region body
PF: predicated region fallthrough
CT: control target
= control target key end

     0   :  { %7 = vsyncpa [#allocation3], 0  ;;  %s429_s0 = inlined_call_operand.hbm [shape: bf16[2,8,512], index: 0, kind: input, shape index: {}]   ;;  %s430_s1 = inlined_call_operand.hbm [shape: s8[2,512], index: 1, kind: input, shape index: {}]   ;;  %s431_s2 = inlined_call_operand.hbm [shape: f32[2,2,8,128], index: 2, kind: output, shape index: {}]  }
   0x1   :  { %8 = vsyncpa [#allocation6], 0 }
   0x2   :  { %9 = vsyncpa [#allocation4], 0  ;;  %s354_s9 = smov [#allocation2]   ;;  %s282_s13 = scalar_lea.hbm %s429_s0, 512 }
   0x3   :  { %s19_s10 = sshll.u32 %s354_s9, 4  ;;  %p283_p0 = scmp.ne.s32.totalorder %s429_s0, %s282_s13  ;;  %s20_s10 = int_to_ptr.vmem [resolvable:$true] %s19_s10 }
   0x4   :  { %p286_p1 = scmp.lt.u32.totalorder %s282_s13, %s429_s0 }
   0x6   :  { %p288_p2 = pnand %p286_p1, %p283_p0 }
   0x8   :  { %291 = shalt.err (!%p288_p2)
}
   0x9   :  { %s292_s18 = scalar_lea.vmem %s20_s10, 512  ;;  %p297_p4 = scmp.lt.s32.totalorder %s20_s10, %s20_s10 }
   0xa   :  { %p293_p3 = scmp.ne.s32.totalorder %s20_s10, %s292_s18  ;;  %p298_p5 = scmp.lt.s32.totalorder %s292_s18, %s292_s18 }
   0xc   :  { %p299_p6 = por %p298_p5, %p297_p4 }
   0xe   :  { %p300_p7 = pnand %p299_p6, %p293_p3 }
  0x10   :  { %303 = shalt.err (!%p300_p7)
}
  0x11   :  { %s355_s19 = smov 256   ;;  %s356_s20 = smov 16  }
  0x12   :  { %25 = dma.hbm_to_vmem [thread:$0]  %s429_s0, 512, %s20_s10, [#allocation3], %s355_s19, %s355_s19, %s356_s20  }
  0x13   :  { %s357_s23 = smov [#allocation5]   ;;  %s304_s27 = scalar_lea.hbm %s430_s1, 64 }
  0x14   :  { %s36_s24 = sshll.u32 %s357_s23, 4  ;;  %p305_p8 = scmp.ne.s32.totalorder %s430_s1, %s304_s27  ;;  %s37_s24 = int_to_ptr.vmem [resolvable:$true] %s36_s24 }
  0x15   :  { %p308_p9 = scmp.lt.u32.totalorder %s304_s27, %s430_s1 }
  0x17   :  { %p310_p10 = pnand %p308_p9, %p305_p8 }
  0x19   :  { %313 = shalt.err (!%p310_p10)
}
  0x1a   :  { %s314_s4 = scalar_lea.vmem %s37_s24, 64  ;;  %p319_p12 = scmp.lt.s32.totalorder %s37_s24, %s37_s24 }
  0x1b   :  { %p315_p11 = scmp.ne.s32.totalorder %s37_s24, %s314_s4  ;;  %p320_p13 = scmp.lt.s32.totalorder %s314_s4, %s314_s4 }
  0x1d   :  { %p321_p0 = por %p320_p13, %p319_p12 }
  0x1f   :  { %p322_p1 = pnand %p321_p0, %p315_p11 }
  0x21   :  { %325 = shalt.err (!%p322_p1)
}
  0x22   :  { %39 = dma.hbm_to_vmem [thread:$0]  %s430_s1, 64, %s37_s24, [#allocation6]  }
  0x23   :  { %348 = dma.done.wait [#allocation3], 512  }
  0x24   :  { %349 = vsyncadd [#allocation3], 4294966784 }
  0x25   :  { %350 = dma.done.wait [#allocation6], 64  }
  0x26   :  { %351 = vsyncadd [#allocation6], 4294967232  ;;  %v58_v0 = vlaneseq  ;;  %v358_v1 = vmov 1966171168   ;;  %v60_v6 = vld [vmem:[#allocation2] sm:$0xff]   ;;  %v405_v14 = vld [vmem:[#allocation2 + $0x8] sm:$0xff]  }
  0x27   :  { %v67_v2 = vunpack.c.l.s4 %v358_v1  ;;  %v64_v7 = vld [vmem:[#allocation5] sm:$0x1]  ;;  %v110_v9 = vld [vmem:[#allocation5 + $0x1] sm:$0x1]  ;;  %v62_v10 = vunpack.c.l.bf16 %v60_v6  ;;  %v107_v12 = vunpack.c.h.bf16 %v60_v6  ;;  %v156_v15 = vld [vmem:[#allocation5 + $0x2] sm:$0x1]  ;;  %v153_v17 = vunpack.c.l.bf16 %v405_v14 }
  0x28   :  { %v401_v3 = vshrl.u32 %v58_v0, 7  ;;  %v65_v11 = vunpack.c.0.s8 %v64_v7  ;;  %v111_v13 = vunpack.c.0.s8 %v110_v9  ;;  %v202_v16 = vld [vmem:[#allocation5 + $0x3] sm:$0x1]  ;;  %v157_v18 = vunpack.c.0.s8 %v156_v15  ;;  %v61_v21 = vld [vmem:[#allocation2 + $0x10] sm:$0xff]   ;;  %v152_v22 = vld [vmem:[#allocation2 + $0x18] sm:$0xff]   ;;  %s359_s1 = smov [#allocation7]  }
  0x29   :  { %v68_v4 = vunpack.c.0.s8 %v67_v2  ;;  %v199_v19 = vunpack.c.h.bf16 %v405_v14  ;;  %v203_v20 = vunpack.c.0.s8 %v202_v16  ;;  %v63_v25 = vunpack.c.l.bf16 %v61_v21  ;;  %s260_s6 = sshll.u32 %s359_s1, 4  ;;  %s261_s6 = int_to_ptr.vmem [resolvable:$true] %s260_s6 }
  0x2a   :  { %v90_v8 = vsub.s32 0, %v401_v3  ;;  %v108_v26 = vunpack.c.h.bf16 %v61_v21  ;;  %v154_v29 = vunpack.c.l.bf16 %v152_v22  ;;  %v200_v30 = vunpack.c.h.bf16 %v152_v22  ;;  %s326_s7 = scalar_lea.vmem %s261_s6, 512  ;;  %p331_p3 = scmp.lt.s32.totalorder %s261_s6, %s261_s6 }
  0x2b   :  { %v71_v5 = vsub.s32 %v68_v4, %v401_v3  ;;  %v148_v59 = vadd.f32 %v107_v12, %v62_v10  ;;  %p327_p2 = scmp.ne.s32.totalorder %s261_s6, %s326_s7  ;;  %p332_p4 = scmp.lt.s32.totalorder %s326_s7, %s326_s7 }
  0x2c   :  { %v149_v60 = vadd.f32 %v108_v26, %v63_v25 }
  0x2d   :  { %v72_v23 = vrot.slane %v65_v11, %v71_v5  ;;  %v118_v24 = vrot.slane %v111_v13, %v71_v5  ;;  %v164_v27 = vrot.slane %v157_v18, %v71_v5  ;;  %v210_v28 = vrot.slane %v203_v20, %v71_v5  ;;  %p333_p5 = por %p332_p4, %p331_p3 }
  0x2e   :  { %v194_v1 = vadd.f32 %v153_v17, %v148_v59  ;;  %v195_v4 = vadd.f32 %v154_v29, %v149_v60 }
  0x2f   :  { %v80_v31 = vrot.slane %v72_v23, %v71_v5  ;;  %v126_v32 = vrot.slane %v118_v24, %v71_v5  ;;  %v73_v33 = vcombine.high %v72_v23, %v72_v23  ;;  %v119_v34 = vcombine.high %v118_v24, %v118_v24  ;;  %p334_p6 = pnand %p333_p5, %p327_p2 }
  0x30   :  { %v172_v35 = vrot.slane %v164_v27, %v71_v5  ;;  %v218_v36 = vrot.slane %v210_v28, %v71_v5  ;;  %v165_v37 = vcombine.high %v164_v27, %v164_v27  ;;  %v211_v38 = vcombine.high %v210_v28, %v210_v28 }
  0x31   :  { %v91_v39 = vrot.slane %v80_v31, %v90_v8  ;;  %v137_v40 = vrot.slane %v126_v32, %v90_v8  ;;  %v87_v41 = vrot.slane %v73_v33, %v71_v5  ;;  %v133_v42 = vrot.slane %v119_v34, %v71_v5 }
  0x32   :  { %v183_v43 = vrot.slane %v172_v35, %v90_v8  ;;  %v229_v44 = vrot.slane %v218_v36, %v90_v8  ;;  %v179_v45 = vrot.slane %v165_v37, %v71_v5  ;;  %v225_v46 = vrot.slane %v211_v38, %v71_v5 }
  0x33   :  { %vm96_vm0 = vcmp.eq.s32.totalorder %v91_v39, %v401_v3  ;;  %vm142_vm1 = vcmp.eq.s32.totalorder %v137_v40, %v401_v3  ;;  %v95_v47 = vrot.slane %v87_v41, %v90_v8  ;;  %v141_v48 = vrot.slane %v133_v42, %v90_v8 }
  0x34   :  { %v98_v49 = vsel %vm96_vm0, %v62_v10, 0.0  ;;  %v144_v50 = vsel %vm142_vm1, %v107_v12, 0.0  ;;  %vm188_vm2 = vcmp.eq.s32.totalorder %v183_v43, %v401_v3  ;;  %vm234_vm3 = vcmp.eq.s32.totalorder %v229_v44, %v401_v3 }
  0x35   :  { %v146_v51 = vadd.f32 %v144_v50, %v98_v49  ;;  %v190_v52 = vsel %vm188_vm2, %v153_v17, 0.0  ;;  %v236_v53 = vsel %vm234_vm3, %v199_v19, 0.0  ;;  %vm97_vm4 = vcmp.eq.s32.totalorder %v95_v47, %v401_v3 }
  0x36   :  { %v99_v54 = vsel %vm97_vm4, %v63_v25, 0.0  ;;  %vm143_vm5 = vcmp.eq.s32.totalorder %v141_v48, %v401_v3  ;;  %v187_v55 = vrot.slane %v179_v45, %v90_v8  ;;  %v233_v56 = vrot.slane %v225_v46, %v90_v8 }
  0x37   :  { %v192_v57 = vadd.f32 %v190_v52, %v146_v51  ;;  %v145_v58 = vsel %vm143_vm5, %v108_v26, 0.0  ;;  %v240_v5 = vadd.f32 %v199_v19, %v194_v1  ;;  %v241_v7 = vadd.f32 %v200_v30, %v195_v4 }
  0x38   :  { %v147_v61 = vadd.f32 %v145_v58, %v99_v54  ;;  %vm189_vm6 = vcmp.eq.s32.totalorder %v187_v55, %v401_v3  ;;  %vm235_vm7 = vcmp.eq.s32.totalorder %v233_v56, %v401_v3 }
  0x39   :  { %v238_v62 = vadd.f32 %v236_v53, %v192_v57  ;;  %v191_v63 = vsel %vm189_vm6, %v154_v29, 0.0  ;;  %v237_v0 = vsel %vm235_vm7, %v200_v30, 0.0  ;;  %253 = vst [vmem:[#allocation7 + $0x10] sm:$0xff] %v240_v5  ;;  %254 = vst [vmem:[#allocation7 + $0x18] sm:$0xff] %v241_v7 }
  0x3a   :  { %v193_v2 = vadd.f32 %v191_v63, %v147_v61 }
  0x3b   :  { %246 = vst [vmem:[#allocation7] sm:$0xff] %v238_v62 }
  0x3c   :  { %v239_v6 = vadd.f32 %v237_v0, %v193_v2 }
  0x3e   :  { %247 = vst [vmem:[#allocation7 + $0x8] sm:$0xff] %v239_v6 }
  0x3f   :  { %337 = shalt.err (!%p334_p6)
}
  0x40   :  { %s338_s10 = scalar_lea.hbm %s431_s2, 512 }
  0x41   :  { %p339_p7 = scmp.ne.s32.totalorder %s431_s2, %s338_s10  ;;  %p342_p8 = scmp.lt.u32.totalorder %s338_s10, %s431_s2 }
  0x43   :  { %p344_p9 = pnand %p342_p8, %p339_p7 }
  0x45   :  { %347 = shalt.err (!%p344_p9)
}
  0x46   :  { %s360_s15 = smov 128   ;;  %s361_s16 = smov 8  }
  0x47   :  { %266 = dma.vmem_to_hbm [thread:$0]  %s261_s6, 512, %s431_s2, [#allocation4], %s360_s15, %s360_s15, %s361_s16  }
  0x48   :  { %352 = dma.done.wait [#allocation4], 512  }
  0x49   :  { %353 = vsyncadd [#allocation4], 4294966784 }
  0x4a   :  { %270 = vsyncpa [#allocation3], 1 }
  0x4b   :  { %271 = vsyncpa [#allocation6], 1 }
  0x4c   :  { %272 = vsyncpa [#allocation4], 1 }

</bundles_post_ra>
